<compile_context>
chip_gen: v7x
topology: tpu7x:2x2x1
jax: 0.10.0
libtpu: 0.0.40
codegen_flags: <defaults>
</compile_context>

<pallas_src>
import functools

import jax
import jax.numpy as jnp
from jax.experimental import pallas as pl
from jax.experimental.pallas import tpu as pltpu


def _round_up(x, m):
    return (x + m - 1) // m * m


def critic_kernel(state_ref, action_ref,
                  w14s_ref, w14a_ref, b14_ref,
                  w2_ref, b2_ref, w5_ref, b5_ref,
                  w3z_ref, w6z_ref, b36_ref,
                  q_ref, *, hidden):
    f32 = jnp.float32
    bf16 = jnp.bfloat16

    state = state_ref[...].astype(bf16)          # (TB, S)
    action = action_ref[...].astype(bf16)        # (TB, A)

    # ---- fused layer 1 of both heads: relu([state|action] @ [W1||W4] + [b1||b4]) ----
    h = (jnp.dot(state, w14s_ref[...], preferred_element_type=f32)
         + jnp.dot(action, w14a_ref[...], preferred_element_type=f32)
         + b14_ref[...])
    h = jnp.maximum(h, 0.0)                      # (TB, 2H) f32

    h1 = h[:, :hidden].astype(bf16)              # lane-aligned slices (hidden % 128 == 0)
    h2 = h[:, hidden:].astype(bf16)

    # ---- per-head layer 2 ----
    g1 = jnp.maximum(
        jnp.dot(h1, w2_ref[...], preferred_element_type=f32) + b2_ref[...], 0.0)
    g2 = jnp.maximum(
        jnp.dot(h2, w5_ref[...], preferred_element_type=f32) + b5_ref[...], 0.0)

    # ---- layer 3 of both heads -> one lane-dense (TB, 2) store (no select/iota) ----
    q = (jnp.dot(g1.astype(bf16), w3z_ref[...], preferred_element_type=f32)   # [q1 | 0]
         + jnp.dot(g2.astype(bf16), w6z_ref[...], preferred_element_type=f32)  # [0 | q2]
         + b36_ref[...])                                                       # + [b3, b6]
    q_ref[...] = q


def critic_forward(state, action, params, *, block_b=256):
    """state: (B, S) f32, action: (B, A) f32.  Returns (q1, q2), each (B, 1) f32."""
    B, state_dim = state.shape
    action_dim = action.shape[1]
    hidden = params["w2"].shape[0]

    # Batch tile: multiple of 8 sublanes, capped so per-tile activations stay small.
    TB = min(block_b, _round_up(B, 8))
    Bp = _round_up(B, TB)
    if Bp != B:
        pad = Bp - B
        state = jnp.pad(state, ((0, pad), (0, 0)))
        action = jnp.pad(action, ((0, pad), (0, 0)))

    grid = (Bp // TB,)

    def batch_spec(cols):
        return pl.BlockSpec((TB, cols), lambda i: (i, 0))

    def resident_spec(arr):
        # Same block for every grid step -> weights/biases stay resident in VMEM.
        return pl.BlockSpec(arr.shape, lambda i: (0, 0))

    args = (state, action,
            params["w14s"], params["w14a"], params["b14"],
            params["w2"], params["b2"], params["w5"], params["b5"],
            params["w3z"], params["w6z"], params["b36"])

    in_specs = ([batch_spec(state_dim), batch_spec(action_dim)]
                + [resident_spec(a) for a in args[2:]])

    q = pl.pallas_call(
        functools.partial(critic_kernel, hidden=hidden),
        out_shape=jax.ShapeDtypeStruct((Bp, 2), jnp.float32),
        grid=grid,
        in_specs=in_specs,
        out_specs=batch_spec(2),
        compiler_params=pltpu.CompilerParams(
            dimension_semantics=("parallel",)),   # shards batch tiles across v7x's 2 TCs
    )(*args)

    return q[:B, 0:1], q[:B, 1:2]


def init_params(key, state_dim, action_dim, hidden=256):
    """PyTorch-style init; weights stored transposed (in, out), fused/split for the kernel."""
    in_dim = state_dim + action_dim

    def linear(key, fan_in, fan_out):
        kw, kb = jax.random.split(key)
        bound = 1.0 / jnp.sqrt(jnp.float32(fan_in))    # U(-1/sqrt(fan_in), +1/sqrt(fan_in))
        w = jax.random.uniform(kw, (fan_in, fan_out), jnp.float32, -bound, bound)
        b = jax.random.uniform(kb, (1, fan_out), jnp.float32, -bound, bound)
        return w, b

    keys = jax.random.split(key, 6)
    w1, b1 = linear(keys[0], in_dim, hidden)
    w2, b2 = linear(keys[1], hidden, hidden)
    w3, b3 = linear(keys[2], hidden, 1)
    w4, b4 = linear(keys[3], in_dim, hidden)
    w5, b5 = linear(keys[4], hidden, hidden)
    w6, b6 = linear(keys[5], hidden, 1)

    w14 = jnp.concatenate([w1, w4], axis=1)            # (in_dim, 2H): fused heads, layer 1
    zeros = jnp.zeros((hidden, 1), jnp.float32)
    bf16 = jnp.bfloat16
    return {
        # bf16 weights (halve HBM bytes, native MXU); f32 biases.
        "w14s": w14[:state_dim, :].astype(bf16),       # state rows of [W1||W4]
        "w14a": w14[state_dim:, :].astype(bf16),       # action rows of [W1||W4]
        "b14": jnp.concatenate([b1, b4], axis=1),      # (1, 2H)
        "w2": w2.astype(bf16), "b2": b2,
        "w5": w5.astype(bf16), "b5": b5,
        "w3z": jnp.concatenate([w3, zeros], axis=1).astype(bf16),   # (H, 2) == [w3 | 0]
        "w6z": jnp.concatenate([zeros, w6], axis=1).astype(bf16),   # (H, 2) == [0 | w6]
        "b36": jnp.concatenate([b3, b6], axis=1),      # (1, 2)  == [b3, b6]
    }


if __name__ == "__main__":
    key = jax.random.PRNGKey(0)
    k_state, k_action, k_params = jax.random.split(key, 3)

    B, state_dim, action_dim, H = 8, 12, 4, 256
    state = jax.random.normal(k_state, (B, state_dim), jnp.float32)
    action = jax.random.normal(k_action, (B, action_dim), jnp.float32)
    params = init_params(k_params, state_dim, action_dim, hidden=H)

    q1, q2 = critic_forward(state, action, params)
    jax.block_until_ready((q1, q2))

    # ---- reference: original PyTorch-style twin-MLP forward in plain JAX (f32 math
    #      on the same bf16-stored weights) ----
    f32 = jnp.float32
    w14 = jnp.concatenate([params["w14s"], params["w14a"]], axis=0).astype(f32)
    w1, w4 = w14[:, :H], w14[:, H:]
    b1, b4 = params["b14"][:, :H], params["b14"][:, H:]
    w2, b2 = params["w2"].astype(f32), params["b2"]
    w5, b5 = params["w5"].astype(f32), params["b5"]
    w3, w6 = params["w3z"][:, 0:1].astype(f32), params["w6z"][:, 1:2].astype(f32)
    b3, b6 = params["b36"][:, 0:1], params["b36"][:, 1:2]

    sa = jnp.concatenate([state, action], axis=1)
    r1 = jnp.maximum(sa @ w1 + b1, 0.0)
    r1 = jnp.maximum(r1 @ w2 + b2, 0.0)
    r1 = r1 @ w3 + b3
    r2 = jnp.maximum(sa @ w4 + b4, 0.0)
    r2 = jnp.maximum(r2 @ w5 + b5, 0.0)
    r2 = r2 @ w6 + b6

    assert q1.shape == (B, 1) and q2.shape == (B, 1)
    # bf16 MXU inputs with f32 accumulation -> compare with bf16-appropriate tolerance.
    assert jnp.allclose(q1, r1, atol=1e-2, rtol=1e-2), "Q1 mismatch"
    assert jnp.allclose(q2, r2, atol=1e-2, rtol=1e-2), "Q2 mismatch"
    print("KERNEL_OK")
</pallas_src>

<mosaic_0001>
module attributes {stable_mosaic.version = 11 : i64} {
  func.func @critic_kernel(%arg0: i32, %arg1: memref<8x12xf32, #tpu.memory_space<vmem>>, %arg2: memref<8x4xf32, #tpu.memory_space<vmem>>, %arg3: memref<12x512xbf16, #tpu.memory_space<vmem>>, %arg4: memref<4x512xbf16, #tpu.memory_space<vmem>>, %arg5: memref<1x512xf32, #tpu.memory_space<vmem>>, %arg6: memref<256x256xbf16, #tpu.memory_space<vmem>>, %arg7: memref<1x256xf32, #tpu.memory_space<vmem>>, %arg8: memref<256x256xbf16, #tpu.memory_space<vmem>>, %arg9: memref<1x256xf32, #tpu.memory_space<vmem>>, %arg10: memref<256x2xbf16, #tpu.memory_space<vmem>>, %arg11: memref<256x2xbf16, #tpu.memory_space<vmem>>, %arg12: memref<1x2xf32, #tpu.memory_space<vmem>>, %arg13: memref<8x2xf32, #tpu.memory_space<vmem>>) attributes {dimension_semantics = [#tpu.dimension_semantics<parallel>], iteration_bounds = array<i64: 1>, scalar_prefetch = 0 : i64, scratch_operands = 0 : i64, tpu.core_type = #tpu.core_type<tc>, window_params = [{transform_indices = @transform_0, window_bounds = array<i64: 8, 12>}, {transform_indices = @transform_1, window_bounds = array<i64: 8, 4>}, {pipeline_mode = #tpu.pipeline_mode<synchronous>, transform_indices = @transform_2, window_bounds = array<i64: 12, 512>}, {pipeline_mode = #tpu.pipeline_mode<synchronous>, transform_indices = @transform_3, window_bounds = array<i64: 4, 512>}, {pipeline_mode = #tpu.pipeline_mode<synchronous>, transform_indices = @transform_4, window_bounds = array<i64: 1, 512>}, {pipeline_mode = #tpu.pipeline_mode<synchronous>, transform_indices = @transform_5, window_bounds = array<i64: 256, 256>}, {pipeline_mode = #tpu.pipeline_mode<synchronous>, transform_indices = @transform_6, window_bounds = array<i64: 1, 256>}, {pipeline_mode = #tpu.pipeline_mode<synchronous>, transform_indices = @transform_7, window_bounds = array<i64: 256, 256>}, {pipeline_mode = #tpu.pipeline_mode<synchronous>, transform_indices = @transform_8, window_bounds = array<i64: 1, 256>}, {pipeline_mode = #tpu.pipeline_mode<synchronous>, transform_indices = @transform_9, window_bounds = array<i64: 256, 2>}, {pipeline_mode = #tpu.pipeline_mode<synchronous>, transform_indices = @transform_10, window_bounds = array<i64: 256, 2>}, {pipeline_mode = #tpu.pipeline_mode<synchronous>, transform_indices = @transform_11, window_bounds = array<i64: 1, 2>}, {transform_indices = @transform_12, window_bounds = array<i64: 8, 2>}]} {
    %c0 = arith.constant 0 : index
    %c0_0 = arith.constant 0 : index
    %0 = vector.load %arg1[%c0, %c0_0] : memref<8x12xf32, #tpu.memory_space<vmem>>, vector<8x12xf32>
    %1 = arith.truncf %0 : vector<8x12xf32> to vector<8x12xbf16>
    %c0_1 = arith.constant 0 : index
    %c0_2 = arith.constant 0 : index
    %2 = vector.load %arg2[%c0_1, %c0_2] : memref<8x4xf32, #tpu.memory_space<vmem>>, vector<8x4xf32>
    %3 = arith.truncf %2 : vector<8x4xf32> to vector<8x4xbf16>
    %c0_3 = arith.constant 0 : index
    %c0_4 = arith.constant 0 : index
    %4 = vector.load %arg3[%c0_3, %c0_4] : memref<12x512xbf16, #tpu.memory_space<vmem>>, vector<12x512xbf16>
    %cst = arith.constant dense<0.000000e+00> : vector<8x512xf32>
    %5 = tpu.matmul %1, %4, %cst {dimension_numbers = #tpu.dot_dimension_numbers<[1], [0], [0], [1], [0, 0, 1, 1], [], []>} : vector<8x12xbf16>, vector<12x512xbf16>, vector<8x512xf32> -> vector<8x512xf32>
    %c0_5 = arith.constant 0 : index
    %c0_6 = arith.constant 0 : index
    %6 = vector.load %arg4[%c0_5, %c0_6] : memref<4x512xbf16, #tpu.memory_space<vmem>>, vector<4x512xbf16>
    %cst_7 = arith.constant dense<0.000000e+00> : vector<8x512xf32>
    %7 = tpu.matmul %3, %6, %cst_7 {dimension_numbers = #tpu.dot_dimension_numbers<[1], [0], [0], [1], [0, 0, 1, 1], [], []>} : vector<8x4xbf16>, vector<4x512xbf16>, vector<8x512xf32> -> vector<8x512xf32>
    %8 = arith.addf %5, %7 : vector<8x512xf32>
    %c0_8 = arith.constant 0 : index
    %c0_9 = arith.constant 0 : index
    %9 = vector.load %arg5[%c0_8, %c0_9] : memref<1x512xf32, #tpu.memory_space<vmem>>, vector<1x512xf32>
    %10 = vector.broadcast %9 : vector<1x512xf32> to vector<8x512xf32>
    %11 = arith.addf %8, %10 : vector<8x512xf32>
    %cst_10 = arith.constant 0.000000e+00 : f32
    %12 = vector.broadcast %cst_10 : f32 to vector<8x512xf32>
    %13 = arith.maximumf %11, %12 : vector<8x512xf32>
    %14 = vector.extract_strided_slice %13 {offsets = [0, 0], sizes = [8, 256], strides = [1, 1]} : vector<8x512xf32> to vector<8x256xf32>
    %15 = arith.truncf %14 : vector<8x256xf32> to vector<8x256xbf16>
    %16 = vector.extract_strided_slice %13 {offsets = [0, 256], sizes = [8, 256], strides = [1, 1]} : vector<8x512xf32> to vector<8x256xf32>
    %17 = arith.truncf %16 : vector<8x256xf32> to vector<8x256xbf16>
    %c0_11 = arith.constant 0 : index
    %c0_12 = arith.constant 0 : index
    %18 = vector.load %arg6[%c0_11, %c0_12] : memref<256x256xbf16, #tpu.memory_space<vmem>>, vector<256x256xbf16>
    %cst_13 = arith.constant dense<0.000000e+00> : vector<8x256xf32>
    %19 = tpu.matmul %15, %18, %cst_13 {dimension_numbers = #tpu.dot_dimension_numbers<[1], [0], [0], [1], [0, 0, 1, 1], [], []>} : vector<8x256xbf16>, vector<256x256xbf16>, vector<8x256xf32> -> vector<8x256xf32>
    %c0_14 = arith.constant 0 : index
    %c0_15 = arith.constant 0 : index
    %20 = vector.load %arg7[%c0_14, %c0_15] : memref<1x256xf32, #tpu.memory_space<vmem>>, vector<1x256xf32>
    %21 = vector.broadcast %20 : vector<1x256xf32> to vector<8x256xf32>
    %22 = arith.addf %19, %21 : vector<8x256xf32>
    %cst_16 = arith.constant 0.000000e+00 : f32
    %23 = vector.broadcast %cst_16 : f32 to vector<8x256xf32>
    %24 = arith.maximumf %22, %23 : vector<8x256xf32>
    %c0_17 = arith.constant 0 : index
    %c0_18 = arith.constant 0 : index
    %25 = vector.load %arg8[%c0_17, %c0_18] : memref<256x256xbf16, #tpu.memory_space<vmem>>, vector<256x256xbf16>
    %cst_19 = arith.constant dense<0.000000e+00> : vector<8x256xf32>
    %26 = tpu.matmul %17, %25, %cst_19 {dimension_numbers = #tpu.dot_dimension_numbers<[1], [0], [0], [1], [0, 0, 1, 1], [], []>} : vector<8x256xbf16>, vector<256x256xbf16>, vector<8x256xf32> -> vector<8x256xf32>
    %c0_20 = arith.constant 0 : index
    %c0_21 = arith.constant 0 : index
    %27 = vector.load %arg9[%c0_20, %c0_21] : memref<1x256xf32, #tpu.memory_space<vmem>>, vector<1x256xf32>
    %28 = vector.broadcast %27 : vector<1x256xf32> to vector<8x256xf32>
    %29 = arith.addf %26, %28 : vector<8x256xf32>
    %cst_22 = arith.constant 0.000000e+00 : f32
    %30 = vector.broadcast %cst_22 : f32 to vector<8x256xf32>
    %31 = arith.maximumf %29, %30 : vector<8x256xf32>
    %32 = arith.truncf %24 : vector<8x256xf32> to vector<8x256xbf16>
    %c0_23 = arith.constant 0 : index
    %c0_24 = arith.constant 0 : index
    %33 = vector.load %arg10[%c0_23, %c0_24] : memref<256x2xbf16, #tpu.memory_space<vmem>>, vector<256x2xbf16>
    %cst_25 = arith.constant dense<0.000000e+00> : vector<8x2xf32>
    %34 = tpu.matmul %32, %33, %cst_25 {dimension_numbers = #tpu.dot_dimension_numbers<[1], [0], [0], [1], [0, 0, 1, 1], [], []>} : vector<8x256xbf16>, vector<256x2xbf16>, vector<8x2xf32> -> vector<8x2xf32>
    %35 = arith.truncf %31 : vector<8x256xf32> to vector<8x256xbf16>
    %c0_26 = arith.constant 0 : index
    %c0_27 = arith.constant 0 : index
    %36 = vector.load %arg11[%c0_26, %c0_27] : memref<256x2xbf16, #tpu.memory_space<vmem>>, vector<256x2xbf16>
    %cst_28 = arith.constant dense<0.000000e+00> : vector<8x2xf32>
    %37 = tpu.matmul %35, %36, %cst_28 {dimension_numbers = #tpu.dot_dimension_numbers<[1], [0], [0], [1], [0, 0, 1, 1], [], []>} : vector<8x256xbf16>, vector<256x2xbf16>, vector<8x2xf32> -> vector<8x2xf32>
    %38 = arith.addf %34, %37 : vector<8x2xf32>
    %c0_29 = arith.constant 0 : index
    %c0_30 = arith.constant 0 : index
    %39 = vector.load %arg12[%c0_29, %c0_30] : memref<1x2xf32, #tpu.memory_space<vmem>>, vector<1x2xf32>
    %40 = vector.broadcast %39 : vector<1x2xf32> to vector<8x2xf32>
    %41 = arith.addf %38, %40 : vector<8x2xf32>
    %c0_31 = arith.constant 0 : index
    %c0_32 = arith.constant 0 : index
    %42 = vector.load %arg13[%c0_31, %c0_32] : memref<8x2xf32, #tpu.memory_space<vmem>>, vector<8x2xf32>
    tpu.vector_store %arg13[%c0_31, %c0_32], %41 {strides = array<i32>} : memref<8x2xf32, #tpu.memory_space<vmem>>, vector<8x2xf32>,
    return
  }
  func.func @transform_0(%arg0: i32) -> (i32, i32) {
    %c0_i32 = arith.constant 0 : i32
    %c0_i32_0 = arith.constant 0 : i32
    return %arg0, %c0_i32 : i32, i32
  }
  func.func @transform_1(%arg0: i32) -> (i32, i32) {
    %c0_i32 = arith.constant 0 : i32
    %c0_i32_0 = arith.constant 0 : i32
    return %arg0, %c0_i32 : i32, i32
  }
  func.func @transform_2(%arg0: i32) -> (i32, i32) {
    %c0_i32 = arith.constant 0 : i32
    %c0_i32_0 = arith.constant 0 : i32
    %c0_i32_1 = arith.constant 0 : i32
    return %c0_i32, %c0_i32_0 : i32, i32
  }
  func.func @transform_3(%arg0: i32) -> (i32, i32) {
    %c0_i32 = arith.constant 0 : i32
    %c0_i32_0 = arith.constant 0 : i32
    %c0_i32_1 = arith.constant 0 : i32
    return %c0_i32, %c0_i32_0 : i32, i32
  }
  func.func @transform_4(%arg0: i32) -> (i32, i32) {
    %c0_i32 = arith.constant 0 : i32
    %c0_i32_0 = arith.constant 0 : i32
    %c0_i32_1 = arith.constant 0 : i32
    return %c0_i32, %c0_i32_0 : i32, i32
  }
  func.func @transform_5(%arg0: i32) -> (i32, i32) {
    %c0_i32 = arith.constant 0 : i32
    %c0_i32_0 = arith.constant 0 : i32
    %c0_i32_1 = arith.constant 0 : i32
    return %c0_i32, %c0_i32_0 : i32, i32
  }
  func.func @transform_6(%arg0: i32) -> (i32, i32) {
    %c0_i32 = arith.constant 0 : i32
    %c0_i32_0 = arith.constant 0 : i32
    %c0_i32_1 = arith.constant 0 : i32
    return %c0_i32, %c0_i32_0 : i32, i32
  }
  func.func @transform_7(%arg0: i32) -> (i32, i32) {
    %c0_i32 = arith.constant 0 : i32
    %c0_i32_0 = arith.constant 0 : i32
    %c0_i32_1 = arith.constant 0 : i32
    return %c0_i32, %c0_i32_0 : i32, i32
  }
  func.func @transform_8(%arg0: i32) -> (i32, i32) {
    %c0_i32 = arith.constant 0 : i32
    %c0_i32_0 = arith.constant 0 : i32
    %c0_i32_1 = arith.constant 0 : i32
    return %c0_i32, %c0_i32_0 : i32, i32
  }
  func.func @transform_9(%arg0: i32) -> (i32, i32) {
    %c0_i32 = arith.constant 0 : i32
    %c0_i32_0 = arith.constant 0 : i32
    %c0_i32_1 = arith.constant 0 : i32
    return %c0_i32, %c0_i32_0 : i32, i32
  }
  func.func @transform_10(%arg0: i32) -> (i32, i32) {
    %c0_i32 = arith.constant 0 : i32
    %c0_i32_0 = arith.constant 0 : i32
    %c0_i32_1 = arith.constant 0 : i32
    return %c0_i32, %c0_i32_0 : i32, i32
  }
  func.func @transform_11(%arg0: i32) -> (i32, i32) {
    %c0_i32 = arith.constant 0 : i32
    %c0_i32_0 = arith.constant 0 : i32
    %c0_i32_1 = arith.constant 0 : i32
    return %c0_i32, %c0_i32_0 : i32, i32
  }
  func.func @transform_12(%arg0: i32) -> (i32, i32) {
    %c0_i32 = arith.constant 0 : i32
    %c0_i32_0 = arith.constant 0 : i32
    return %arg0, %c0_i32 : i32, i32
  }
}

</mosaic_0001>

<bundles_post_ra>
// kernel: tpu_custom_call.1
= control target key start
LH: loop header
LB: loop body
LE: loop exit
PB: predicated region body
PF: predicated region fallthrough
CT: control target
= control target key end

     0   :  { %17 = vsyncpa [#allocation3], 0  ;;  %s1979_s0 = inlined_call_operand.hbm [shape: f32[8,12], index: 0, kind: input, shape index: {}]   ;;  %s1980_s1 = inlined_call_operand.vmem [shape: f32[8,4], index: 1, kind: input, shape index: {}]   ;;  %s1981_s2 = inlined_call_operand.vmem [shape: bf16[12,512], index: 2, kind: input, shape index: {}]   ;;  %s1982_s3 = inlined_call_operand.hbm [shape: bf16[4,512], index: 3, kind: input, shape index: {}]   ;;  %s1983_s4 = inlined_call_operand.hbm [shape: f32[1,512], index: 4, kind: input, shape index: {}]   ;;  %s1984_s5 = inlined_call_operand.vmem [shape: bf16[256,256], index: 5, kind: input, shape index: {}]   ;;  %s1985_s6 = inlined_call_operand.vmem [shape: f32[1,256], index: 6, kind: input, shape index: {}]   ;;  %s1986_s7 = inlined_call_operand.hbm [shape: bf16[256,256], index: 7, kind: input, shape index: {}]   ;;  %s1987_s8 = inlined_call_operand.vmem [shape: f32[1,256], index: 8, kind: input, shape index: {}]   ;;  %s1988_s9 = inlined_call_operand.vmem [shape: bf16[256,2], index: 9, kind: input, shape index: {}]   ;;  %s1989_s10 = inlined_call_operand.vmem [shape: bf16[256,2], index: 10, kind: input, shape index: {}]   ;;  %s1990_s11 = inlined_call_operand.vmem [shape: f32[1,2], index: 11, kind: input, shape index: {}]   ;;  %s1991_s12 = inlined_call_operand.vmem [shape: f32[8,2], index: 12, kind: output, shape index: {}]  }
   0x1   :  { %18 = vsyncpa [#allocation5], 0 }
   0x2   :  { %19 = vsyncpa [#allocation8], 0  ;;  %s1607_s21 = smov [#allocation4]   ;;  %s1608_s23 = smov [#allocation2]  }
   0x3   :  { %s40_s22 = sshll.u32 %s1607_s21, 4  ;;  %s26_s24 = sshll.u32 %s1608_s23, 4  ;;  %s41_s22 = int_to_ptr.vmem [resolvable:$true] %s40_s22  ;;  %s27_s24 = int_to_ptr.vmem [resolvable:$true] %s26_s24 }
   0x4   :  { %s1513_s27 = scalar_lea.hbm %s1982_s3, 128 }
   0x5   :  { %p1514_p0 = scmp.ne.s32.totalorder %s1982_s3, %s1513_s27  ;;  %p1517_p1 = scmp.lt.u32.totalorder %s1513_s27, %s1982_s3 }
   0x7   :  { %p1519_p2 = pnand %p1517_p1, %p1514_p0 }
   0x9   :  { %1522 = shalt.err (!%p1519_p2)
}
   0xa   :  { %s1523_s14 = scalar_lea.vmem %s41_s22, 128  ;;  %p1528_p4 = scmp.lt.s32.totalorder %s41_s22, %s41_s22 }
   0xb   :  { %p1524_p3 = scmp.ne.s32.totalorder %s41_s22, %s1523_s14  ;;  %p1529_p5 = scmp.lt.s32.totalorder %s1523_s14, %s1523_s14 }
   0xd   :  { %p1530_p6 = por %p1529_p5, %p1528_p4 }
   0xf   :  { %p1531_p7 = pnand %p1530_p6, %p1524_p3 }
  0x11   :  { %1534 = shalt.err (!%p1531_p7)
}
  0x12   :  { %43 = dma.hbm_to_vmem [thread:$0]  %s1982_s3, 128, %s41_s22, [#allocation5]  }
  0x13   :  { %s1535_s19 = scalar_lea.hbm %s1979_s0, 128 }
  0x14   :  { %p1536_p8 = scmp.ne.s32.totalorder %s1979_s0, %s1535_s19  ;;  %p1539_p9 = scmp.lt.u32.totalorder %s1535_s19, %s1979_s0 }
  0x16   :  { %p1541_p10 = pnand %p1539_p9, %p1536_p8 }
  0x18   :  { %1544 = shalt.err (!%p1541_p10)
}
  0x19   :  { %s1545_s26 = scalar_lea.vmem %s27_s24, 128  ;;  %p1550_p12 = scmp.lt.s32.totalorder %s27_s24, %s27_s24 }
  0x1a   :  { %p1546_p11 = scmp.ne.s32.totalorder %s27_s24, %s1545_s26  ;;  %p1551_p13 = scmp.lt.s32.totalorder %s1545_s26, %s1545_s26 }
  0x1c   :  { %p1552_p0 = por %p1551_p13, %p1550_p12 }
  0x1e   :  { %p1553_p1 = pnand %p1552_p0, %p1546_p11 }
  0x20   :  { %1556 = shalt.err (!%p1553_p1)
}
  0x21   :  { %29 = dma.hbm_to_vmem [thread:$0]  %s1979_s0, 128, %s27_s24, [#allocation3]  }
  0x22   :  { %s1609_s27 = smov [#allocation6]   ;;  %s1610_s29 = smov [#allocation7]  }
  0x23   :  { %s50_s28 = sshll.u32 %s1609_s27, 4  ;;  %s63_s30 = sshll.u32 %s1610_s29, 4  ;;  %s51_s28 = int_to_ptr.vmem [resolvable:$true] %s50_s28  ;;  %s1704_s30 = int_to_ptr.vmem [resolvable:$true] %s63_s30 }
  0x24   :  { %s1557_s15 = scalar_lea.hbm %s1983_s4, 64 }
  0x25   :  { %p1558_p2 = scmp.ne.s32.totalorder %s1983_s4, %s1557_s15  ;;  %p1561_p3 = scmp.lt.u32.totalorder %s1557_s15, %s1983_s4 }
  0x27   :  { %p1563_p4 = pnand %p1561_p3, %p1558_p2 }
  0x29   :  { %1566 = shalt.err (!%p1563_p4)
}
  0x2a   :  { %s1567_s0 = scalar_lea.vmem %s51_s28, 64  ;;  %p1572_p6 = scmp.lt.s32.totalorder %s51_s28, %s51_s28 }
  0x2b   :  { %p1568_p5 = scmp.ne.s32.totalorder %s51_s28, %s1567_s0  ;;  %p1573_p7 = scmp.lt.s32.totalorder %s1567_s0, %s1567_s0 }
  0x2d   :  { %p1574_p8 = por %p1573_p7, %p1572_p6 }
  0x2f   :  { %p1575_p9 = pnand %p1574_p8, %p1568_p5 }
  0x31   :  { %1578 = shalt.err (!%p1575_p9)
}
  0x32   :  { %53 = dma.hbm_to_vmem [thread:$0]  %s1983_s4, 64, %s51_s28, [#allocation5]  }
  0x33   :  { %s1579_s25 = scalar_lea.hbm %s1986_s7, 4096 }
  0x34   :  { %p1580_p10 = scmp.ne.s32.totalorder %s1986_s7, %s1579_s25  ;;  %p1583_p11 = scmp.lt.u32.totalorder %s1579_s25, %s1986_s7 }
  0x36   :  { %p1585_p12 = pnand %p1583_p11, %p1580_p10 }
  0x38   :  { %1588 = shalt.err (!%p1585_p12)
}
  0x39   :  { %s1589_s29 = scalar_lea.vmem %s1704_s30, 4096  ;;  %p1594_p0 = scmp.lt.s32.totalorder %s1704_s30, %s1704_s30 }
  0x3a   :  { %p1590_p13 = scmp.ne.s32.totalorder %s1704_s30, %s1589_s29  ;;  %p1595_p1 = scmp.lt.s32.totalorder %s1589_s29, %s1589_s29 }
  0x3c   :  { %p1596_p2 = por %p1595_p1, %p1594_p0 }
  0x3e   :  { %p1597_p3 = pnand %p1596_p2, %p1590_p13 }
  0x40   :  { %1600 = shalt.err (!%p1597_p3)
}
  0x41   :  { %s1611_s4 = smov 128   ;;  %s1612_s28 = smov 8  }
  0x42   :  { %69 = dma.hbm_to_vmem [thread:$0]  %s1986_s7, 4096, %s1704_s30, [#allocation8], %s1611_s4, %s1611_s4, %s1612_s28  }
  0x43   :  { %1601 = dma.done.wait [#allocation3], 128  }
  0x44   :  { %1602 = vsyncadd [#allocation3], 4294967168 }
  0x45   :  { %1603 = dma.done.wait [#allocation5], 192  }
  0x46   :  { %1604 = vsyncadd [#allocation5], 4294967104 }
  0x47   :  { %1605 = dma.done.wait [#allocation8], 4096  }
  0x48   :  { %1606 = vsyncadd [#allocation8], 4294963200  ;;  %v105_v0 = vlaneseq  ;;  %v1613_v1 = vmov 1983009808   ;;  %v1614_v3 = vmov 0   ;;  %v99_v7 = vld [vmem:[#allocation4] sm:$0xff] }
  0x49   :  { %v103_v2 = vunpack.c.l.s4 %v1613_v1  ;;  %167 = vmatprep.mubr.bf16.mxu0 %v1614_v3  ;;  %208 = vmatprep.mubr.bf16.mxu1 %v1614_v3  ;;  %vm122_vm0 = vcmask 1041408   ;;  %v101_v9 = vcombine.high %v99_v7, %v99_v7  ;;  %v93_v10 = vld [vmem:[%s1980_s1] sm:$0xff]  ;;  %vm237_vm1 = vcmask 1045504   ;;  %v1381_v16 = vld [vmem:[%s1981_s2 + $0xc] ss:$16 sps:$4 sm:$0x3f]  }
  0x4a   :  { %v1735_v4 = vshrl.u32 %v105_v0, 7  ;;  %v1379_v11 = vld [vmem:[%s1981_s2 + $0x4] ss:$16 sps:$4 sm:$0x3f]   ;;  %v94_v19 = vpack.c.bf16 %v93_v10, %v93_v10  ;;  %vm118_vm2 = vcmask 31744   ;;  %vm233_vm3 = vcmask 97280  }
  0x4b   :  { %v104_v5 = vunpack.c.0.s8 %v103_v2  ;;  %v1383_v15 = vld [vmem:[%s1981_s2] ss:$16 sps:$4 sm:$0x3f]   ;;  %v1384_v20 = vld [vmem:[%s1981_s2 + $0x8] ss:$16 sps:$4 sm:$0x3f]  }
  0x4c   :  { %v239_v21 = vsel %vm237_vm1, %v1383_v15, 0  ;;  %v1387_v22 = vld [vmem:[%s1984_s5 + $0x4] ss:$8 sps:$4 sm:$0xff]   ;;  %v245_v23 = vsel %vm237_vm1, %v1384_v20, 0  ;;  %v1390_v24 = vld [vmem:[#allocation7 + $0x4] ss:$8 sps:$4 sm:$0xff]  }
  0x4d   :  { %v107_v6 = vsub.s32 %v104_v5, %v1735_v4  ;;  %v91_v25 = vld [vmem:[#allocation2] sm:$0xff]  ;;  %v1393_v28 = vld [vmem:[%s1984_s5 + $0x14] ss:$8 sps:$4 sm:$0xff]   ;;  %v1396_v30 = vld [vmem:[#allocation7 + $0x14] ss:$8 sps:$4 sm:$0xff]   ;;  %vm1208_vm4 = vcmask 15360  }
  0x4e   :  { %v92_v26 = vpack.c.bf16 %v91_v25, %v91_v25  ;;  %v1385_v27 = vld [vmem:[%s1984_s5] ss:$8 sps:$4 sm:$0xff]   ;;  %v1388_v29 = vld [vmem:[#allocation7] ss:$8 sps:$4 sm:$0xff]   ;;  %v1391_v31 = vld [vmem:[%s1984_s5 + $0x10] ss:$8 sps:$4 sm:$0xff]  }
  0x4f   :  { %v108_v8 = vrot.slane %v99_v7, %v107_v6  ;;  %v115_v14 = vrot.slane %v101_v9, %v107_v6  ;;  %v1399_v32 = vld [vmem:[%s1984_s5 + $0x24] ss:$8 sps:$4 sm:$0xff]   ;;  %v1402_v34 = vld [vmem:[#allocation7 + $0x24] ss:$8 sps:$4 sm:$0xff]   ;;  %v1405_v36 = vld [vmem:[%s1984_s5 + $0x34] ss:$8 sps:$4 sm:$0xff]  }
  0x50   :  { %v1394_v33 = vld [vmem:[#allocation7 + $0x10] ss:$8 sps:$4 sm:$0xff]   ;;  %v1397_v35 = vld [vmem:[%s1984_s5 + $0x20] ss:$8 sps:$4 sm:$0xff]   ;;  %v1400_v37 = vld [vmem:[#allocation7 + $0x20] ss:$8 sps:$4 sm:$0xff]  }
  0x51   :  { %v116_v12 = vcombine.high %v108_v8, %v108_v8  ;;  %v124_v13 = vsel %vm122_vm0, %v108_v8, 0  ;;  %v117_v17 = vcombine.high %v115_v14, %v115_v14  ;;  %v130_v18 = vsel %vm122_vm0, %v115_v14, 0  ;;  %v1408_v38 = vld [vmem:[#allocation7 + $0x34] ss:$8 sps:$4 sm:$0xff]   ;;  %v1411_v40 = vld [vmem:[%s1984_s5 + $0x44] ss:$8 sps:$4 sm:$0xff]  }
  0x52   :  { %v1403_v39 = vld [vmem:[%s1984_s5 + $0x30] ss:$8 sps:$4 sm:$0xff]   ;;  %v1406_v41 = vld [vmem:[#allocation7 + $0x30] ss:$8 sps:$4 sm:$0xff]   ;;  %v1409_v43 = vld [vmem:[%s1984_s5 + $0x40] ss:$8 sps:$4 sm:$0xff]  }
  0x53   :  { %1217 = vmatprep.subr.msk.bf16.mxu0 %vm122_vm0, %v116_v12  ;;  %1219 = vmatprep.subr.msk.bf16.mxu1 %vm122_vm0, %v117_v17  ;;  %v1414_v42 = vld [vmem:[#allocation7 + $0x44] ss:$8 sps:$4 sm:$0xff]   ;;  %v1417_v44 = vld [vmem:[%s1984_s5 + $0x54] ss:$8 sps:$4 sm:$0xff]   ;;  %v1420_v47 = vld [vmem:[#allocation7 + $0x54] ss:$8 sps:$4 sm:$0xff]  }
  0x54   :  { %136 = vmatpush1.bf16.msra.mxu0 %v124_v13  ;;  %177 = vmatpush1.bf16.msra.mxu1 %v130_v18  ;;  %v1412_v45 = vld [vmem:[#allocation7 + $0x40] ss:$8 sps:$4 sm:$0xff]   ;;  %v1415_v46 = vld [vmem:[%s1984_s5 + $0x50] ss:$8 sps:$4 sm:$0xff]   ;;  %v1418_v48 = vld [vmem:[#allocation7 + $0x50] ss:$8 sps:$4 sm:$0xff]  }
  0x55   :  { %1225 = vmatprep.subr.msk.bf16.mxu0 %vm237_vm1, %v1379_v11  ;;  %1227 = vmatprep.subr.msk.bf16.mxu1 %vm237_vm1, %v1381_v16  ;;  %v1423_v49 = vld [vmem:[%s1984_s5 + $0x64] ss:$8 sps:$4 sm:$0xff]   ;;  %v1426_v50 = vld [vmem:[#allocation7 + $0x64] ss:$8 sps:$4 sm:$0xff]   ;;  %v1429_v52 = vld [vmem:[%s1984_s5 + $0x74] ss:$8 sps:$4 sm:$0xff]  }
  0x56   :  { %v1421_v51 = vld [vmem:[%s1984_s5 + $0x60] ss:$8 sps:$4 sm:$0xff]   ;;  %v1424_v53 = vld [vmem:[#allocation7 + $0x60] ss:$8 sps:$4 sm:$0xff]   ;;  %v1427_v55 = vld [vmem:[%s1984_s5 + $0x70] ss:$8 sps:$4 sm:$0xff]  }
  0x57   :  { %1218 = vmatmul.mubr.msk.bf16.vlgmr.msra.gmra.mrb[0].mxu0 %vm118_vm2, %v94_v19  ;;  %1220 = vmatmul.mubr.msk.bf16.vlgmr.msra.gmra.mrb[0].mxu1 %vm118_vm2, %v94_v19  ;;  %v1432_v54 = vld [vmem:[#allocation7 + $0x74] ss:$8 sps:$4 sm:$0xff]   ;;  %v1435_v56 = vld [vmem:[%s1984_s5 + $0x84] ss:$8 sps:$4 sm:$0xff]   ;;  %v1438_v58 = vld [vmem:[#allocation7 + $0x84] ss:$8 sps:$4 sm:$0xff]  }
  0x58   :  { %251 = vmatpush1.bf16.msra.mxu0 %v239_v21  ;;  %282 = vmatprep.mubr.bf16.mxu0 %v1614_v3  ;;  %v1430_v57 = vld [vmem:[#allocation7 + $0x70] ss:$8 sps:$4 sm:$0xff]   ;;  %v1433_v59 = vld [vmem:[%s1984_s5 + $0x80] ss:$8 sps:$4 sm:$0xff]   ;;  %v1441_v60 = vld [vmem:[%s1984_s5 + $0x94] ss:$8 sps:$4 sm:$0xff]  }
  0x59   :  { %570 = vmatprep.subr.bf16.mxu0 %v1387_v22  ;;  %292 = vmatpush1.bf16.msra.mxu1 %v245_v23  ;;  %v1436_v61 = vld [vmem:[#allocation7 + $0x80] ss:$8 sps:$4 sm:$0xff]   ;;  %v1444_v62 = vld [vmem:[#allocation7 + $0x94] ss:$8 sps:$4 sm:$0xff]   ;;  %v1447_v0 = vld [vmem:[%s1984_s5 + $0xa4] ss:$8 sps:$4 sm:$0xff]  }
  0x5a   :  { %323 = vmatprep.mubr.bf16.mxu1 %v1614_v3  ;;  %817 = vmatprep.subr.bf16.mxu1 %v1390_v24  ;;  %v1439_v63 = vld [vmem:[%s1984_s5 + $0x90] ss:$8 sps:$4 sm:$0xff]   ;;  %v1442_v1 = vld [vmem:[#allocation7 + $0x90] ss:$8 sps:$4 sm:$0xff]   ;;  %v1445_v3 = vld [vmem:[%s1984_s5 + $0xa0] ss:$8 sps:$4 sm:$0xff]  }
  0x5b   :  { %v1450_v2 = vld [vmem:[#allocation7 + $0xa4] ss:$8 sps:$4 sm:$0xff]   ;;  %v1453_v5 = vld [vmem:[%s1984_s5 + $0xb4] ss:$8 sps:$4 sm:$0xff]   ;;  %v1456_v8 = vld [vmem:[#allocation7 + $0xb4] ss:$8 sps:$4 sm:$0xff]  }
  0x5c   :  { %v1448_v6 = vld [vmem:[#allocation7 + $0xa0] ss:$8 sps:$4 sm:$0xff]   ;;  %v1451_v7 = vld [vmem:[%s1984_s5 + $0xb0] ss:$8 sps:$4 sm:$0xff]   ;;  %v1454_v9 = vld [vmem:[#allocation7 + $0xb0] ss:$8 sps:$4 sm:$0xff]  }
  0x5d   :  { %v1459_v10 = vld [vmem:[%s1984_s5 + $0xc4] ss:$8 sps:$4 sm:$0xff]   ;;  %v1457_v11 = vld [vmem:[%s1984_s5 + $0xc0] ss:$8 sps:$4 sm:$0xff]   ;;  %v1460_v13 = vld [vmem:[#allocation7 + $0xc0] ss:$8 sps:$4 sm:$0xff]  }
  0x5e   :  { %v1462_v12 = vld [vmem:[#allocation7 + $0xc4] ss:$8 sps:$4 sm:$0xff]   ;;  %v1465_v15 = vld [vmem:[%s1984_s5 + $0xd4] ss:$8 sps:$4 sm:$0xff]   ;;  %v1468_v16 = vld [vmem:[#allocation7 + $0xd4] ss:$8 sps:$4 sm:$0xff]  }
  0x5f   :  { %1226 = vmatmul.mubr.msk.bf16.vlgmr.msra.gmra.mrb[4].mxu0 %vm233_vm3, %v92_v26  ;;  %1228 = vmatmul.mubr.msk.bf16.vlgmr.msra.gmra.mrb[4].mxu1 %vm233_vm3, %v92_v26  ;;  %v1463_v14 = vld [vmem:[%s1984_s5 + $0xd0] ss:$8 sps:$4 sm:$0xff]   ;;  %v1466_v17 = vld [vmem:[#allocation7 + $0xd0] ss:$8 sps:$4 sm:$0xff]   ;;  %v1469_v19 = vld [vmem:[%s1984_s5 + $0xe0] ss:$8 sps:$4 sm:$0xff]  }
  0x60   :  { %571 = vmatpush1.bf16.msra.mxu0 %v1385_v27  ;;  %818 = vmatpush1.bf16.msra.mxu1 %v1388_v29  ;;  %v1471_v18 = vld [vmem:[%s1984_s5 + $0xe4] ss:$8 sps:$4 sm:$0xff]   ;;  %v1474_v20 = vld [vmem:[#allocation7 + $0xe4] ss:$8 sps:$4 sm:$0xff]   ;;  %v1472_v21 = vld [vmem:[#allocation7 + $0xe0] ss:$8 sps:$4 sm:$0xff]  }
  0x61   :  { %572 = vmatprep.subr.bf16.mxu0 %v1393_v28  ;;  %819 = vmatprep.subr.bf16.mxu1 %v1396_v30  ;;  %v1477_v22 = vld [vmem:[%s1984_s5 + $0xf4] ss:$8 sps:$4 sm:$0xff]   ;;  %v1475_v23 = vld [vmem:[%s1984_s5 + $0xf0] ss:$8 sps:$4 sm:$0xff]   ;;  %v1478_v25 = vld [vmem:[#allocation7 + $0xf0] ss:$8 sps:$4 sm:$0xff]  }
  0x62   :  { %v1480_v24 = vld [vmem:[#allocation7 + $0xf4] ss:$8 sps:$4 sm:$0xff]   ;;  %v1481_v26 = vld [vmem:[%s1988_s9 + $0x40] sm:$0xff]  }
  0x63   :  { %v1483_v27 = vld [vmem:[%s1989_s10 + $0x40] sm:$0xff]  }
  0x64   :  { %573 = vmatpush1.bf16.msra.mxu0 %v1391_v31  ;;  %820 = vmatpush1.bf16.msra.mxu1 %v1394_v33 }
  0x65   :  { %574 = vmatprep.subr.bf16.mxu0 %v1399_v32  ;;  %821 = vmatprep.subr.bf16.mxu1 %v1402_v34  ;;  %v1864_v34 = vsub.s32 0, %v1735_v4 }
  0x68   :  { %575 = vmatpush1.bf16.msra.mxu0 %v1397_v35  ;;  %822 = vmatpush1.bf16.msra.mxu1 %v1400_v37  ;;  %v1867_v37 = vsub.s32 1, %v1735_v4 }
  0x69   :  { %576 = vmatprep.subr.bf16.mxu0 %v1405_v36  ;;  %823 = vmatprep.subr.bf16.mxu1 %v1408_v38  ;;  %v332_v36 = vld [vmem:[#allocation6] sm:$0xf] }
  0x6c   :  { %577 = vmatpush1.bf16.msra.mxu0 %v1403_v39  ;;  %824 = vmatpush1.bf16.msra.mxu1 %v1406_v41  ;;  %v344_v39 = vsub.s32 2, %v1735_v4  ;;  %v337_v41 = vrot.slane %v332_v36, %v1864_v34 }
  0x6d   :  { %578 = vmatprep.subr.bf16.mxu0 %v1411_v40  ;;  %825 = vmatprep.subr.bf16.mxu1 %v1414_v42  ;;  %v348_v40 = vsub.s32 3, %v1735_v4 }
  0x70   :  { %579 = vmatpush1.bf16.msra.mxu0 %v1409_v43  ;;  %826 = vmatpush1.bf16.msra.mxu1 %v1412_v45  ;;  %v341_v43 = vrot.slane %v332_v36, %v1867_v37 }
  0x71   :  { %580 = vmatprep.subr.bf16.mxu0 %v1417_v44  ;;  %827 = vmatprep.subr.bf16.mxu1 %v1420_v47 }
  0x74   :  { %581 = vmatpush1.bf16.msra.mxu0 %v1415_v46  ;;  %828 = vmatpush1.bf16.msra.mxu1 %v1418_v48  ;;  %v345_v46 = vrot.slane %v332_v36, %v344_v39 }
  0x75   :  { %582 = vmatprep.subr.bf16.mxu0 %v1423_v49  ;;  %829 = vmatprep.subr.bf16.mxu1 %v1426_v50  ;;  %v349_v50 = vrot.slane %v332_v36, %v348_v40  ;;  %v398_v36 = vld [vmem:[%s1985_s6] sm:$0x3] }
  0x76   :  { %v403_v39 = vrot.slane %v398_v36, %v1864_v34  ;;  %v407_v40 = vrot.slane %v398_v36, %v1867_v37 }
  0x78   :  { %583 = vmatpush1.bf16.msra.mxu0 %v1421_v51  ;;  %830 = vmatpush1.bf16.msra.mxu1 %v1424_v53 }
  0x79   :  { %584 = vmatprep.subr.bf16.mxu0 %v1429_v52  ;;  %831 = vmatprep.subr.bf16.mxu1 %v1432_v54 }
  0x7c   :  { %585 = vmatpush1.bf16.msra.mxu0 %v1427_v55  ;;  %832 = vmatpush1.bf16.msra.mxu1 %v1430_v57 }
  0x7d   :  { %586 = vmatprep.subr.bf16.mxu0 %v1435_v56  ;;  %833 = vmatprep.subr.bf16.mxu1 %v1438_v58 }
  0x80   :  { %587 = vmatpush1.bf16.msra.mxu0 %v1433_v59  ;;  %834 = vmatpush1.bf16.msra.mxu1 %v1436_v61 }
  0x81   :  { %588 = vmatprep.subr.bf16.mxu0 %v1441_v60  ;;  %835 = vmatprep.subr.bf16.mxu1 %v1444_v62 }
  0x84   :  { %589 = vmatpush1.bf16.msra.mxu0 %v1439_v63  ;;  %836 = vmatpush1.bf16.msra.mxu1 %v1442_v1  ;;  %v1484_v1 = vld [vmem:[%s1989_s10] sm:$0xff]  }
  0x85   :  { %590 = vmatprep.subr.bf16.mxu0 %v1447_v0  ;;  %837 = vmatprep.subr.bf16.mxu1 %v1450_v2 }
  0x88   :  { %591 = vmatpush1.bf16.msra.mxu0 %v1445_v3  ;;  %838 = vmatpush1.bf16.msra.mxu1 %v1448_v6  ;;  %v1487_v3 = vld [vmem:[%s1989_s10 + $0x48] sm:$0xff]   ;;  %v1482_v6 = vld [vmem:[%s1988_s9] sm:$0xff]  }
  0x89   :  { %592 = vmatprep.subr.bf16.mxu0 %v1453_v5  ;;  %839 = vmatprep.subr.bf16.mxu1 %v1456_v8  ;;  %v1485_v8 = vld [vmem:[%s1988_s9 + $0x48] sm:$0xff]  }
  0x8c   :  { %593 = vmatpush1.bf16.msra.mxu0 %v1451_v7  ;;  %840 = vmatpush1.bf16.msra.mxu1 %v1454_v9  ;;  %v1488_v9 = vld [vmem:[%s1989_s10 + $0x8] sm:$0xff]  }
  0x8d   :  { %594 = vmatprep.subr.bf16.mxu0 %v1459_v10  ;;  %841 = vmatprep.subr.bf16.mxu1 %v1462_v12  ;;  %v1491_v10 = vld [vmem:[%s1989_s10 + $0x50] sm:$0xff]  }
  0x8e   :  { %v1489_v12 = vld [vmem:[%s1988_s9 + $0x50] sm:$0xff]  }
  0x90   :  { %595 = vmatpush1.bf16.msra.mxu0 %v1457_v11  ;;  %842 = vmatpush1.bf16.msra.mxu1 %v1460_v13  ;;  %v1486_v11 = vld [vmem:[%s1988_s9 + $0x8] sm:$0xff]   ;;  %v1492_v13 = vld [vmem:[%s1989_s10 + $0x10] sm:$0xff]  }
  0x91   :  { %596 = vmatprep.subr.bf16.mxu0 %v1465_v15  ;;  %843 = vmatprep.subr.bf16.mxu1 %v1468_v16  ;;  %v1490_v15 = vld [vmem:[%s1988_s9 + $0x10] sm:$0xff]   ;;  %v1493_v16 = vld [vmem:[%s1988_s9 + $0x58] sm:$0xff]  }
  0x94   :  { %597 = vmatpush1.bf16.msra.mxu0 %v1463_v14  ;;  %844 = vmatpush1.bf16.msra.mxu1 %v1466_v17  ;;  %v1495_v14 = vld [vmem:[%s1989_s10 + $0x58] sm:$0xff]  }
  0x95   :  { %598 = vmatprep.subr.bf16.mxu0 %v1471_v18  ;;  %845 = vmatprep.subr.bf16.mxu1 %v1474_v20  ;;  %v1496_v17 = vld [vmem:[%s1989_s10 + $0x18] sm:$0xff]   ;;  %v1499_v18 = vld [vmem:[%s1989_s10 + $0x60] sm:$0xff]  }
  0x96   :  { %v1497_v20 = vld [vmem:[%s1988_s9 + $0x60] sm:$0xff]  }
  0x98   :  { %599 = vmatpush1.bf16.msra.mxu0 %v1469_v19  ;;  %846 = vmatpush1.bf16.msra.mxu1 %v1472_v21  ;;  %v1494_v19 = vld [vmem:[%s1988_s9 + $0x18] sm:$0xff]   ;;  %v1500_v21 = vld [vmem:[%s1989_s10 + $0x20] sm:$0xff]  }
  0x99   :  { %600 = vmatprep.subr.bf16.mxu0 %v1477_v22  ;;  %847 = vmatprep.subr.bf16.mxu1 %v1480_v24  ;;  %v1503_v22 = vld [vmem:[%s1989_s10 + $0x68] sm:$0xff]  }
  0x9a   :  { %v1501_v24 = vld [vmem:[%s1988_s9 + $0x68] sm:$0xff]  }
  0x9c   :  { %601 = vmatpush1.bf16.msra.mxu0 %v1475_v23  ;;  %848 = vmatpush1.bf16.msra.mxu1 %v1478_v25  ;;  %v1498_v23 = vld [vmem:[%s1988_s9 + $0x20] sm:$0xff]   ;;  %v1502_v25 = vld [vmem:[%s1988_s9 + $0x28] sm:$0xff]  }
  0x9d   :  { %1348 = vmatprep.subr.bf16.mxu1 %v1481_v26  ;;  %1326 = vmatprep.subr.bf16.mxu0 %v1483_v27  ;;  %v1504_v26 = vld [vmem:[%s1989_s10 + $0x28] sm:$0xff]   ;;  %v1505_v27 = vld [vmem:[%s1988_s9 + $0x70] sm:$0xff]  }
 0x12a   :  { %v169_v28 = vpop.f32.mrb[0].mxu0  ;;  %v210_v31 = vpop.f32.mrb[0].mxu1 }
 0x12b   :  { %v171_v29 = vpop.f32.mrb[1].mxu0  ;;  %v212_v33 = vpop.f32.mrb[1].mxu1 }
 0x12c   :  { %v173_v30 = vpop.f32.mrb[2].mxu0  ;;  %v214_v35 = vpop.f32.mrb[2].mxu1 }
 0x12d   :  { %v174_v32 = vpop.f32.mrb[3].mxu0  ;;  %v215_v38 = vpop.f32.mrb[3].mxu1  ;;  %v1508_v30 = vld [vmem:[%s1989_s10 + $0x30] sm:$0xff]   ;;  %v1512_v35 = vld [vmem:[%s1989_s10 + $0x38] sm:$0xff]  }
 0x12e   :  { %v1510_v32 = vld [vmem:[%s1988_s9 + $0x38] sm:$0xff]   ;;  %v645_v38 = vld [vmem:[%s1987_s8] sm:$0x3] }
 0x132   :  { %v284_v42 = vpop.f32.mrb[4].mxu0  ;;  %v325_v49 = vpop.f32.mrb[4].mxu1 }
 0x133   :  { %v285_v44 = vadd.f32 %v284_v42, %v169_v28  ;;  %v286_v45 = vpop.f32.mrb[5].mxu0  ;;  %v326_v52 = vadd.f32 %v325_v49, %v210_v31  ;;  %v327_v54 = vpop.f32.mrb[5].mxu1  ;;  %v1506_v28 = vld [vmem:[%s1988_s9 + $0x30] sm:$0xff]   ;;  %v1509_v31 = vld [vmem:[%s1988_s9 + $0x78] sm:$0xff]  }
 0x134   :  { %v287_v47 = vadd.f32 %v286_v45, %v171_v29  ;;  %v288_v48 = vpop.f32.mrb[6].mxu0  ;;  %v328_v56 = vadd.f32 %v327_v54, %v212_v33  ;;  %v329_v57 = vpop.f32.mrb[6].mxu1  ;;  %v1507_v29 = vld [vmem:[%s1989_s10 + $0x70] sm:$0xff]   ;;  %v1511_v33 = vld [vmem:[%s1989_s10 + $0x78] sm:$0xff]  }
 0x135   :  { %v354_v51 = vadd.f32 %v337_v41, %v285_v44  ;;  %v289_v53 = vpop.f32.mrb[7].mxu0  ;;  %v356_v58 = vadd.f32 %v345_v46, %v326_v52  ;;  %v330_v59 = vpop.f32.mrb[7].mxu1  ;;  %v650_v41 = vrot.slane %v645_v38, %v1864_v34 }
 0x136   :  { %v355_v55 = vadd.f32 %v341_v43, %v287_v47  ;;  %v357_v61 = vadd.f32 %v349_v50, %v328_v56  ;;  %v654_v43 = vrot.slane %v645_v38, %v1867_v37 }
 0x137   :  { %v358_v4 = vmax.f32 %v354_v51, 0.0  ;;  %v360_v62 = vmax.f32 %v356_v58, 0.0 }
 0x138   :  { %v359_v60 = vmax.f32 %v355_v55, 0.0  ;;  %v361_v0 = vmax.f32 %v357_v61, 0.0 }
 0x139   :  { %v362_v2 = vpack.c.bf16 %v358_v4, %v358_v4  ;;  %v364_v7 = vpack.c.bf16 %v360_v62, %v360_v62 }
 0x13a   :  { %v363_v63 = vpack.c.bf16 %v359_v60, %v359_v60  ;;  %v365_v5 = vpack.c.bf16 %v361_v0, %v361_v0 }
 0x13c   :  { %602 = vmatprep.mubr.bf16.mxu0 %v363_v63  ;;  %849 = vmatprep.mubr.bf16.mxu1 %v365_v5 }
 0x13d   :  { %603 = vmatmul.mubr.bf16.vlgmr.msra.gmra.mrb[8].mxu0 %v362_v2  ;;  %850 = vmatmul.mubr.bf16.vlgmr.msra.gmra.mrb[8].mxu1 %v364_v7 }
 0x13e   :  { %1327 = vmatpush3.bf16.msra.mxu0 %v1484_v1  ;;  %1349 = vmatpush3.bf16.msra.mxu1 %v1482_v6  ;;  %v1325_v6 = vld [vmem:[%s1990_s11] ss:$0 sm:$0xff] }
 0x13f   :  { %1328 = vmatprep.subr.bf16.mxu0 %v1487_v3  ;;  %1350 = vmatprep.subr.bf16.mxu1 %v1485_v8 }
 0x142   :  { %1329 = vmatpush3.bf16.msra.mxu0 %v1488_v9  ;;  %1351 = vmatpush3.bf16.msra.mxu1 %v1486_v11 }
 0x143   :  { %1330 = vmatprep.subr.bf16.mxu0 %v1491_v10  ;;  %1352 = vmatprep.subr.bf16.mxu1 %v1489_v12 }
 0x146   :  { %1331 = vmatpush3.bf16.msra.mxu0 %v1492_v13  ;;  %1353 = vmatpush3.bf16.msra.mxu1 %v1490_v15 }
 0x147   :  { %1332 = vmatprep.subr.bf16.mxu0 %v1495_v14  ;;  %1354 = vmatprep.subr.bf16.mxu1 %v1493_v16 }
 0x14a   :  { %1333 = vmatpush3.bf16.msra.mxu0 %v1496_v17  ;;  %1355 = vmatpush3.bf16.msra.mxu1 %v1494_v19 }
 0x14b   :  { %1334 = vmatprep.subr.bf16.mxu0 %v1499_v18  ;;  %1356 = vmatprep.subr.bf16.mxu1 %v1497_v20 }
 0x14e   :  { %1335 = vmatpush3.bf16.msra.mxu0 %v1500_v21  ;;  %1357 = vmatpush3.bf16.msra.mxu1 %v1498_v23 }
 0x14f   :  { %1336 = vmatprep.subr.bf16.mxu0 %v1503_v22  ;;  %1358 = vmatprep.subr.bf16.mxu1 %v1501_v24 }
 0x152   :  { %1359 = vmatpush3.bf16.msra.mxu1 %v1502_v25  ;;  %1337 = vmatpush3.bf16.msra.mxu0 %v1504_v26 }
 0x153   :  { %1360 = vmatprep.subr.bf16.mxu1 %v1505_v27  ;;  %1338 = vmatprep.subr.bf16.mxu0 %v1507_v29 }
 0x156   :  { %1361 = vmatpush3.bf16.msra.mxu1 %v1506_v28  ;;  %1339 = vmatpush3.bf16.msra.mxu0 %v1508_v30 }
 0x157   :  { %1362 = vmatprep.subr.bf16.mxu1 %v1509_v31  ;;  %1340 = vmatprep.subr.bf16.mxu0 %v1511_v33 }
 0x15a   :  { %1363 = vmatpush3.bf16.msra.mxu1 %v1510_v32  ;;  %1341 = vmatpush3.bf16.msra.mxu0 %v1512_v35 }
 0x210   :  { %v604_v42 = vpop.f32.mrb[8].mxu0  ;;  %v851_v48 = vpop.f32.mrb[8].mxu1 }
 0x211   :  { %v605_v44 = vadd.f32 %v604_v42, %v403_v39  ;;  %v606_v45 = vpop.f32.mrb[9].mxu0  ;;  %v852_v50 = vadd.f32 %v851_v48, %v650_v41  ;;  %v853_v52 = vpop.f32.mrb[9].mxu1 }
 0x212   :  { %v607_v46 = vadd.f32 %v606_v45, %v407_v40  ;;  %v608_v47 = vpop.f32.mrb[10].mxu0  ;;  %v854_v54 = vadd.f32 %v853_v52, %v654_v43  ;;  %v855_v55 = vpop.f32.mrb[10].mxu1 }
 0x213   :  { %v611_v49 = vmax.f32 %v605_v44, 0.0  ;;  %v609_v51 = vpop.f32.mrb[11].mxu0  ;;  %v858_v56 = vmax.f32 %v852_v50, 0.0  ;;  %v856_v57 = vpop.f32.mrb[11].mxu1 }
 0x214   :  { %v612_v53 = vmax.f32 %v607_v46, 0.0  ;;  %v859_v58 = vmax.f32 %v854_v54, 0.0 }
 0x215   :  { %v860_v34 = vpack.c.bf16 %v611_v49, %v611_v49  ;;  %v894_v37 = vpack.c.bf16 %v858_v56, %v858_v56 }
 0x216   :  { %v861_v4 = vpack.c.bf16 %v612_v53, %v612_v53  ;;  %v895_v59 = vpack.c.bf16 %v859_v58, %v859_v58 }
 0x218   :  { %1192 = vmatprep.mubr.bf16.mxu1 %v861_v4  ;;  %1056 = vmatprep.mubr.bf16.mxu0 %v895_v59 }
 0x219   :  { %1193 = vmatmul.mubr.bf16.vlgmr.msra.gmra.mrb[12].mxu1 %v860_v34  ;;  %1057 = vmatmul.mubr.bf16.vlgmr.msra.gmra.mrb[12].mxu0 %v894_v37 }
 0x2ec   :  { %v1364_v60 = vpop.f32.mrb[12].mxu1  ;;  %v1342_v63 = vpop.f32.mrb[12].mxu0 }
 0x2ed   :  { %v1365_v61 = vpop.f32.mrb[13].mxu1  ;;  %v1343_v1 = vpop.f32.mrb[13].mxu0 }
 0x2ee   :  { %v1366_v62 = vadd.f32 %v1365_v61, %v1364_v60  ;;  %v1367_v0 = vpop.f32.mrb[14].mxu1  ;;  %v1344_v3 = vadd.f32 %v1343_v1, %v1342_v63  ;;  %v1345_v5 = vpop.f32.mrb[14].mxu0 }
 0x2ef   :  { %v1368_v2 = vpop.f32.mrb[15].mxu1  ;;  %v1346_v7 = vpop.f32.mrb[15].mxu0 }
 0x2f0   :  { %v1195_v8 = vadd.f32 %v1366_v62, %v1344_v3 }
 0x2f2   :  { %v1207_v9 = vadd.f32 %v1325_v6, %v1195_v8 }
 0x2f4   :  { %1209 = vst.msk [vmem:[%s1991_s12] sm:$0xff] %vm1208_vm4, %v1207_v9 }
 0x2f5   :  { %1214 = vsyncpa [#allocation3], 1 }
 0x2f6   :  { %1215 = vsyncpa [#allocation5], 1 }
 0x2f7   :  { %1216 = vsyncpa [#allocation8], 1 }

</bundles_post_ra>
